<compile_context>
chip_gen: v7x
topology: tpu7x:2x2x1
jax: 0.10.0
libtpu: 0.0.40
codegen_flags: <defaults>
</compile_context>

<pallas_src>
import functools
import random

import jax
import jax.numpy as jnp
from jax.experimental import pallas as pl
from jax.experimental.pallas import tpu as pltpu

LANE = 128          # lane width: keep feature dims lane-dense
SUBLANE_BF16 = 16   # bf16 sublane packing: row tiles in multiples of 16


def _round_up(v, m):
    return ((v + m - 1) // m) * m


def dynamic_net_kernel(x_ref, w_in_ref, b_in_ref, w_mid_ref, b_mid_ref,
                       w_out_ref, b_out_ref, o_ref, *, n_mid):
    # Hoist bias loads out of the unrolled middle loop (JAX does not CSE the
    # broadcast).
    b_in = b_in_ref[...]     # (1, Hp)  f32
    b_mid = b_mid_ref[...]   # (1, Hp)  f32
    b_out = b_out_ref[...]   # (1, Dp)  f32

    # input linear + ReLU (clamp(min=0)); bf16 MXU operands, f32 accumulation.
    h = jnp.dot(x_ref[...], w_in_ref[...], preferred_element_type=jnp.float32)
    h = jnp.maximum(h + b_in, 0.0)

    # middle linear repeated n_mid times (shared weights), ReLU each time.
    # n_mid is a static Python int -> statically unrolled (0..3 iterations).
    for _ in range(n_mid):
        h = jnp.dot(h.astype(jnp.bfloat16), w_mid_ref[...],
                    preferred_element_type=jnp.float32)
        h = jnp.maximum(h + b_mid, 0.0)

    # output linear (no activation); lane-dense (Dp = multiple of 128) store.
    y = jnp.dot(h.astype(jnp.bfloat16), w_out_ref[...],
                preferred_element_type=jnp.float32)
    o_ref[...] = (y + b_out).astype(o_ref.dtype)


def dynamic_net(x, w_in, b_in, w_mid, b_mid, w_out, b_out, *, n_mid,
                tile_n=512):
    """DynamicNet forward. x: [N, D_in] f32; weights pre-transposed [in, out]."""
    N, D_in = x.shape
    H = w_in.shape[1]
    D_out = w_out.shape[1]

    # Pad feature dims to lane width; zero padding is exact for this network.
    D_in_p = _round_up(D_in, LANE)
    H_p = _round_up(H, LANE)
    D_out_p = _round_up(D_out, LANE)

    # Row tile: multiple of the bf16 sublane pack, capped for VMEM (fits easily
    # within the 32 MiB scoped default even on v7x's 64 MiB VMEM).
    tile_n = min(tile_n, _round_up(N, SUBLANE_BF16))
    N_p = _round_up(N, tile_n)

    # Cast MXU operands to bf16 and zero-pad to lane-dense shapes.
    bf = jnp.bfloat16
    xp = jnp.zeros((N_p, D_in_p), bf).at[:N, :D_in].set(x.astype(bf))
    w_in_p = jnp.zeros((D_in_p, H_p), bf).at[:D_in, :H].set(w_in.astype(bf))
    w_mid_p = jnp.zeros((H_p, H_p), bf).at[:H, :H].set(w_mid.astype(bf))
    w_out_p = jnp.zeros((H_p, D_out_p), bf).at[:H, :D_out].set(w_out.astype(bf))
    b_in_p = jnp.zeros((1, H_p), jnp.float32).at[:, :H].set(b_in)
    b_mid_p = jnp.zeros((1, H_p), jnp.float32).at[:, :H].set(b_mid)
    b_out_p = jnp.zeros((1, D_out_p), jnp.float32).at[:, :D_out].set(b_out)

    kernel = functools.partial(dynamic_net_kernel, n_mid=n_mid)

    # Weights/biases: constant index_map -> DMA'd once, resident in VMEM.
    resident = lambda i: (0, 0)

    out_p = pl.pallas_call(
        kernel,
        out_shape=jax.ShapeDtypeStruct((N_p, D_out_p), jnp.float32),
        grid=(N_p // tile_n,),
        in_specs=[
            pl.BlockSpec((tile_n, D_in_p), lambda i: (i, 0)),   # x (streamed)
            pl.BlockSpec((D_in_p, H_p), resident),              # w_in
            pl.BlockSpec((1, H_p), resident),                   # b_in
            pl.BlockSpec((H_p, H_p), resident),                 # w_mid
            pl.BlockSpec((1, H_p), resident),                   # b_mid
            pl.BlockSpec((H_p, D_out_p), resident),             # w_out
            pl.BlockSpec((1, D_out_p), resident),               # b_out
        ],
        out_specs=pl.BlockSpec((tile_n, D_out_p), lambda i: (i, 0)),
        compiler_params=pltpu.CompilerParams(
            dimension_semantics=("parallel",)),  # shard row tiles across TCs
    )(xp, w_in_p, b_in_p, w_mid_p, b_mid_p, w_out_p, b_out_p)

    return out_p[:N, :D_out]


def dynamic_net_ref(x, w_in, b_in, w_mid, b_mid, w_out, b_out, *, n_mid):
    # Reference mirrors the kernel's mixed precision: bf16 matmul operands,
    # f32 accumulation / bias / ReLU.
    bf = jnp.bfloat16
    h = jnp.dot(x.astype(bf), w_in.astype(bf),
                preferred_element_type=jnp.float32) + b_in
    h = jnp.maximum(h, 0.0)
    for _ in range(n_mid):
        h = jnp.dot(h.astype(bf), w_mid.astype(bf),
                    preferred_element_type=jnp.float32) + b_mid
        h = jnp.maximum(h, 0.0)
    return jnp.dot(h.astype(bf), w_out.astype(bf),
                   preferred_element_type=jnp.float32) + b_out


if __name__ == "__main__":
    # Small shapes consistent with Linear(D_in,H)/(H,H)/(H,D_out).
    N, D_in, H, D_out = 8, 16, 32, 8

    # Deterministic "dynamic" depth, mirroring random.randint(0, 3).
    # TODO(synk): per-call runtime depth would need an SMEM scalar + bounded
    # fori_loop gated by pl.when; here it is frozen at trace time.
    n_mid = random.Random(0).randint(0, 3)

    key = jax.random.PRNGKey(0)
    kx, k1, k2, k3, kb1, kb2, kb3 = jax.random.split(key, 7)

    x = jax.random.normal(kx, (N, D_in), dtype=jnp.float32)

    # PyTorch Linear stores weight as [out, in]; we generate directly in the
    # transposed [in, out] layout used by the kernel.
    w_in = jax.random.normal(k1, (D_in, H), dtype=jnp.float32) * 0.1
    b_in = jax.random.normal(kb1, (1, H), dtype=jnp.float32) * 0.1
    w_mid = jax.random.normal(k2, (H, H), dtype=jnp.float32) * 0.1
    b_mid = jax.random.normal(kb2, (1, H), dtype=jnp.float32) * 0.1
    w_out = jax.random.normal(k3, (H, D_out), dtype=jnp.float32) * 0.1
    b_out = jax.random.normal(kb3, (1, D_out), dtype=jnp.float32) * 0.1

    y = dynamic_net(x, w_in, b_in, w_mid, b_mid, w_out, b_out, n_mid=n_mid)
    y = jax.block_until_ready(y)

    y_ref = dynamic_net_ref(x, w_in, b_in, w_mid, b_mid, w_out, b_out,
                            n_mid=n_mid)
    assert y.shape == (N, D_out)
    assert jnp.allclose(y, y_ref, atol=1e-3, rtol=1e-3), (
        float(jnp.max(jnp.abs(y - y_ref))))

    print("KERNEL_OK")
</pallas_src>

<mosaic_0001>
module attributes {stable_mosaic.version = 11 : i64} {
  func.func @dynamic_net_kernel(%arg0: i32, %arg1: memref<16x128xbf16, #tpu.memory_space<vmem>>, %arg2: memref<128x128xbf16, #tpu.memory_space<vmem>>, %arg3: memref<1x128xf32, #tpu.memory_space<vmem>>, %arg4: memref<128x128xbf16, #tpu.memory_space<vmem>>, %arg5: memref<1x128xf32, #tpu.memory_space<vmem>>, %arg6: memref<128x128xbf16, #tpu.memory_space<vmem>>, %arg7: memref<1x128xf32, #tpu.memory_space<vmem>>, %arg8: memref<16x128xf32, #tpu.memory_space<vmem>>) attributes {dimension_semantics = [#tpu.dimension_semantics<parallel>], iteration_bounds = array<i64: 1>, scalar_prefetch = 0 : i64, scratch_operands = 0 : i64, tpu.core_type = #tpu.core_type<tc>, window_params = [{transform_indices = @transform_0, window_bounds = array<i64: 16, 128>}, {pipeline_mode = #tpu.pipeline_mode<synchronous>, transform_indices = @transform_1, window_bounds = array<i64: 128, 128>}, {pipeline_mode = #tpu.pipeline_mode<synchronous>, transform_indices = @transform_2, window_bounds = array<i64: 1, 128>}, {pipeline_mode = #tpu.pipeline_mode<synchronous>, transform_indices = @transform_3, window_bounds = array<i64: 128, 128>}, {pipeline_mode = #tpu.pipeline_mode<synchronous>, transform_indices = @transform_4, window_bounds = array<i64: 1, 128>}, {pipeline_mode = #tpu.pipeline_mode<synchronous>, transform_indices = @transform_5, window_bounds = array<i64: 128, 128>}, {pipeline_mode = #tpu.pipeline_mode<synchronous>, transform_indices = @transform_6, window_bounds = array<i64: 1, 128>}, {transform_indices = @transform_7, window_bounds = array<i64: 16, 128>}]} {
    %c0 = arith.constant 0 : index
    %c0_0 = arith.constant 0 : index
    %0 = vector.load %arg3[%c0, %c0_0] : memref<1x128xf32, #tpu.memory_space<vmem>>, vector<1x128xf32>
    %c0_1 = arith.constant 0 : index
    %c0_2 = arith.constant 0 : index
    %1 = vector.load %arg5[%c0_1, %c0_2] : memref<1x128xf32, #tpu.memory_space<vmem>>, vector<1x128xf32>
    %c0_3 = arith.constant 0 : index
    %c0_4 = arith.constant 0 : index
    %2 = vector.load %arg7[%c0_3, %c0_4] : memref<1x128xf32, #tpu.memory_space<vmem>>, vector<1x128xf32>
    %c0_5 = arith.constant 0 : index
    %c0_6 = arith.constant 0 : index
    %3 = vector.load %arg1[%c0_5, %c0_6] : memref<16x128xbf16, #tpu.memory_space<vmem>>, vector<16x128xbf16>
    %c0_7 = arith.constant 0 : index
    %c0_8 = arith.constant 0 : index
    %4 = vector.load %arg2[%c0_7, %c0_8] : memref<128x128xbf16, #tpu.memory_space<vmem>>, vector<128x128xbf16>
    %cst = arith.constant dense<0.000000e+00> : vector<16x128xf32>
    %5 = tpu.matmul %3, %4, %cst {dimension_numbers = #tpu.dot_dimension_numbers<[1], [0], [0], [1], [0, 0, 1, 1], [], []>} : vector<16x128xbf16>, vector<128x128xbf16>, vector<16x128xf32> -> vector<16x128xf32>
    %6 = vector.broadcast %0 : vector<1x128xf32> to vector<16x128xf32>
    %7 = arith.addf %5, %6 : vector<16x128xf32>
    %cst_9 = arith.constant 0.000000e+00 : f32
    %8 = vector.broadcast %cst_9 : f32 to vector<16x128xf32>
    %9 = arith.maximumf %7, %8 : vector<16x128xf32>
    %10 = arith.truncf %9 : vector<16x128xf32> to vector<16x128xbf16>
    %c0_10 = arith.constant 0 : index
    %c0_11 = arith.constant 0 : index
    %11 = vector.load %arg4[%c0_10, %c0_11] : memref<128x128xbf16, #tpu.memory_space<vmem>>, vector<128x128xbf16>
    %cst_12 = arith.constant dense<0.000000e+00> : vector<16x128xf32>
    %12 = tpu.matmul %10, %11, %cst_12 {dimension_numbers = #tpu.dot_dimension_numbers<[1], [0], [0], [1], [0, 0, 1, 1], [], []>} : vector<16x128xbf16>, vector<128x128xbf16>, vector<16x128xf32> -> vector<16x128xf32>
    %13 = vector.broadcast %1 : vector<1x128xf32> to vector<16x128xf32>
    %14 = arith.addf %12, %13 : vector<16x128xf32>
    %cst_13 = arith.constant 0.000000e+00 : f32
    %15 = vector.broadcast %cst_13 : f32 to vector<16x128xf32>
    %16 = arith.maximumf %14, %15 : vector<16x128xf32>
    %17 = arith.truncf %16 : vector<16x128xf32> to vector<16x128xbf16>
    %c0_14 = arith.constant 0 : index
    %c0_15 = arith.constant 0 : index
    %18 = vector.load %arg4[%c0_14, %c0_15] : memref<128x128xbf16, #tpu.memory_space<vmem>>, vector<128x128xbf16>
    %cst_16 = arith.constant dense<0.000000e+00> : vector<16x128xf32>
    %19 = tpu.matmul %17, %18, %cst_16 {dimension_numbers = #tpu.dot_dimension_numbers<[1], [0], [0], [1], [0, 0, 1, 1], [], []>} : vector<16x128xbf16>, vector<128x128xbf16>, vector<16x128xf32> -> vector<16x128xf32>
    %20 = vector.broadcast %1 : vector<1x128xf32> to vector<16x128xf32>
    %21 = arith.addf %19, %20 : vector<16x128xf32>
    %cst_17 = arith.constant 0.000000e+00 : f32
    %22 = vector.broadcast %cst_17 : f32 to vector<16x128xf32>
    %23 = arith.maximumf %21, %22 : vector<16x128xf32>
    %24 = arith.truncf %23 : vector<16x128xf32> to vector<16x128xbf16>
    %c0_18 = arith.constant 0 : index
    %c0_19 = arith.constant 0 : index
    %25 = vector.load %arg4[%c0_18, %c0_19] : memref<128x128xbf16, #tpu.memory_space<vmem>>, vector<128x128xbf16>
    %cst_20 = arith.constant dense<0.000000e+00> : vector<16x128xf32>
    %26 = tpu.matmul %24, %25, %cst_20 {dimension_numbers = #tpu.dot_dimension_numbers<[1], [0], [0], [1], [0, 0, 1, 1], [], []>} : vector<16x128xbf16>, vector<128x128xbf16>, vector<16x128xf32> -> vector<16x128xf32>
    %27 = vector.broadcast %1 : vector<1x128xf32> to vector<16x128xf32>
    %28 = arith.addf %26, %27 : vector<16x128xf32>
    %cst_21 = arith.constant 0.000000e+00 : f32
    %29 = vector.broadcast %cst_21 : f32 to vector<16x128xf32>
    %30 = arith.maximumf %28, %29 : vector<16x128xf32>
    %31 = arith.truncf %30 : vector<16x128xf32> to vector<16x128xbf16>
    %c0_22 = arith.constant 0 : index
    %c0_23 = arith.constant 0 : index
    %32 = vector.load %arg6[%c0_22, %c0_23] : memref<128x128xbf16, #tpu.memory_space<vmem>>, vector<128x128xbf16>
    %cst_24 = arith.constant dense<0.000000e+00> : vector<16x128xf32>
    %33 = tpu.matmul %31, %32, %cst_24 {dimension_numbers = #tpu.dot_dimension_numbers<[1], [0], [0], [1], [0, 0, 1, 1], [], []>} : vector<16x128xbf16>, vector<128x128xbf16>, vector<16x128xf32> -> vector<16x128xf32>
    %34 = vector.broadcast %2 : vector<1x128xf32> to vector<16x128xf32>
    %35 = arith.addf %33, %34 : vector<16x128xf32>
    %c0_25 = arith.constant 0 : index
    %c0_26 = arith.constant 0 : index
    %36 = vector.load %arg8[%c0_25, %c0_26] : memref<16x128xf32, #tpu.memory_space<vmem>>, vector<16x128xf32>
    tpu.vector_store %arg8[%c0_25, %c0_26], %35 {strides = array<i32>} : memref<16x128xf32, #tpu.memory_space<vmem>>, vector<16x128xf32>,
    return
  }
  func.func @transform_0(%arg0: i32) -> (i32, i32) {
    %c0_i32 = arith.constant 0 : i32
    %c0_i32_0 = arith.constant 0 : i32
    return %arg0, %c0_i32 : i32, i32
  }
  func.func @transform_1(%arg0: i32) -> (i32, i32) {
    %c0_i32 = arith.constant 0 : i32
    %c0_i32_0 = arith.constant 0 : i32
    %c0_i32_1 = arith.constant 0 : i32
    return %c0_i32, %c0_i32_0 : i32, i32
  }
  func.func @transform_2(%arg0: i32) -> (i32, i32) {
    %c0_i32 = arith.constant 0 : i32
    %c0_i32_0 = arith.constant 0 : i32
    %c0_i32_1 = arith.constant 0 : i32
    return %c0_i32, %c0_i32_0 : i32, i32
  }
  func.func @transform_3(%arg0: i32) -> (i32, i32) {
    %c0_i32 = arith.constant 0 : i32
    %c0_i32_0 = arith.constant 0 : i32
    %c0_i32_1 = arith.constant 0 : i32
    return %c0_i32, %c0_i32_0 : i32, i32
  }
  func.func @transform_4(%arg0: i32) -> (i32, i32) {
    %c0_i32 = arith.constant 0 : i32
    %c0_i32_0 = arith.constant 0 : i32
    %c0_i32_1 = arith.constant 0 : i32
    return %c0_i32, %c0_i32_0 : i32, i32
  }
  func.func @transform_5(%arg0: i32) -> (i32, i32) {
    %c0_i32 = arith.constant 0 : i32
    %c0_i32_0 = arith.constant 0 : i32
    %c0_i32_1 = arith.constant 0 : i32
    return %c0_i32, %c0_i32_0 : i32, i32
  }
  func.func @transform_6(%arg0: i32) -> (i32, i32) {
    %c0_i32 = arith.constant 0 : i32
    %c0_i32_0 = arith.constant 0 : i32
    %c0_i32_1 = arith.constant 0 : i32
    return %c0_i32, %c0_i32_0 : i32, i32
  }
  func.func @transform_7(%arg0: i32) -> (i32, i32) {
    %c0_i32 = arith.constant 0 : i32
    %c0_i32_0 = arith.constant 0 : i32
    return %arg0, %c0_i32 : i32, i32
  }
}

</mosaic_0001>

<bundles_post_ra>
// kernel: tpu_custom_call.1
= control target key start
LH: loop header
LB: loop body
LE: loop exit
PB: predicated region body
PF: predicated region fallthrough
CT: control target
= control target key end

     0   :  { %12 = vsyncpa [#allocation3], 0  ;;  %s1085_s0 = inlined_call_operand.hbm [shape: bf16[16,128], index: 0, kind: input, shape index: {}]   ;;  %s1086_s1 = inlined_call_operand.hbm [shape: bf16[128,128], index: 1, kind: input, shape index: {}]   ;;  %s1087_s2 = inlined_call_operand.vmem [shape: f32[1,128], index: 2, kind: input, shape index: {}]   ;;  %s1088_s3 = inlined_call_operand.hbm [shape: bf16[128,128], index: 3, kind: input, shape index: {}]   ;;  %s1089_s4 = inlined_call_operand.vmem [shape: f32[1,128], index: 4, kind: input, shape index: {}]   ;;  %s1090_s5 = inlined_call_operand.hbm [shape: bf16[128,128], index: 5, kind: input, shape index: {}]   ;;  %s1091_s6 = inlined_call_operand.vmem [shape: f32[1,128], index: 6, kind: input, shape index: {}]   ;;  %s1092_s7 = inlined_call_operand.hbm [shape: f32[16,128], index: 7, kind: output, shape index: {}]  }
   0x1   :  { %13 = vsyncpa [#allocation6], 0 }
   0x2   :  { %14 = vsyncpa [#allocation9], 0 }
   0x3   :  { %15 = vsyncpa [#allocation4], 0  ;;  %s869_s24 = smov [#allocation5]   ;;  %s870_s26 = smov [#allocation2]  }
   0x4   :  { %s33_s25 = sshll.u32 %s869_s24, 4  ;;  %s21_s27 = sshll.u32 %s870_s26, 4  ;;  %s34_s25 = int_to_ptr.vmem [resolvable:$true] %s33_s25  ;;  %s920_s27 = int_to_ptr.vmem [resolvable:$true] %s21_s27 }
   0x5   :  { %s751_s30 = scalar_lea.hbm %s1086_s1, 1024 }
   0x6   :  { %p752_p0 = scmp.ne.s32.totalorder %s1086_s1, %s751_s30  ;;  %p755_p1 = scmp.lt.u32.totalorder %s751_s30, %s1086_s1 }
   0x8   :  { %p757_p2 = pnand %p755_p1, %p752_p0 }
   0xa   :  { %760 = shalt.err (!%p757_p2)
}
   0xb   :  { %s761_s12 = scalar_lea.vmem %s34_s25, 1024  ;;  %p766_p4 = scmp.lt.s32.totalorder %s34_s25, %s34_s25 }
   0xc   :  { %p762_p3 = scmp.ne.s32.totalorder %s34_s25, %s761_s12  ;;  %p767_p5 = scmp.lt.s32.totalorder %s761_s12, %s761_s12 }
   0xe   :  { %p768_p6 = por %p767_p5, %p766_p4 }
  0x10   :  { %p769_p7 = pnand %p768_p6, %p762_p3 }
  0x12   :  { %772 = shalt.err (!%p769_p7)
}
  0x13   :  { %s871_s13 = smov 64   ;;  %s872_s14 = smov 4  }
  0x14   :  { %39 = dma.hbm_to_vmem [thread:$0]  %s1086_s1, 1024, %s34_s25, [#allocation6], %s871_s13, %s871_s13, %s872_s14  }
  0x15   :  { %s773_s19 = scalar_lea.hbm %s1085_s0, 128 }
  0x16   :  { %p774_p8 = scmp.ne.s32.totalorder %s1085_s0, %s773_s19  ;;  %p777_p9 = scmp.lt.u32.totalorder %s773_s19, %s1085_s0 }
  0x18   :  { %p779_p10 = pnand %p777_p9, %p774_p8 }
  0x1a   :  { %782 = shalt.err (!%p779_p10)
}
  0x1b   :  { %s783_s24 = scalar_lea.vmem %s920_s27, 128  ;;  %p788_p12 = scmp.lt.s32.totalorder %s920_s27, %s920_s27 }
  0x1c   :  { %p784_p11 = scmp.ne.s32.totalorder %s920_s27, %s783_s24  ;;  %p789_p13 = scmp.lt.s32.totalorder %s783_s24, %s783_s24 }
  0x1e   :  { %p790_p0 = por %p789_p13, %p788_p12 }
  0x20   :  { %p791_p1 = pnand %p790_p0, %p784_p11 }
  0x22   :  { %794 = shalt.err (!%p791_p1)
}
  0x23   :  { %27 = dma.hbm_to_vmem [thread:$0]  %s1085_s0, 128, %s920_s27, [#allocation3], %s871_s13, %s871_s13, %s872_s14  }
  0x24   :  { %s873_s26 = smov [#allocation7]   ;;  %s874_s29 = smov [#allocation8]  }
  0x25   :  { %s47_s28 = sshll.u32 %s873_s26, 4  ;;  %s61_s30 = sshll.u32 %s874_s29, 4  ;;  %s48_s28 = int_to_ptr.vmem [resolvable:$true] %s47_s28  ;;  %s957_s30 = int_to_ptr.vmem [resolvable:$true] %s61_s30 }
  0x26   :  { %s795_s10 = scalar_lea.hbm %s1088_s3, 1024 }
  0x27   :  { %p796_p2 = scmp.ne.s32.totalorder %s1088_s3, %s795_s10  ;;  %p799_p3 = scmp.lt.u32.totalorder %s795_s10, %s1088_s3 }
  0x29   :  { %p801_p4 = pnand %p799_p3, %p796_p2 }
  0x2b   :  { %804 = shalt.err (!%p801_p4)
}
  0x2c   :  { %s805_s0 = scalar_lea.vmem %s48_s28, 1024  ;;  %p810_p6 = scmp.lt.s32.totalorder %s48_s28, %s48_s28 }
  0x2d   :  { %p806_p5 = scmp.ne.s32.totalorder %s48_s28, %s805_s0  ;;  %p811_p7 = scmp.lt.s32.totalorder %s805_s0, %s805_s0 }
  0x2f   :  { %p812_p8 = por %p811_p7, %p810_p6 }
  0x31   :  { %p813_p9 = pnand %p812_p8, %p806_p5 }
  0x33   :  { %816 = shalt.err (!%p813_p9)
}
  0x34   :  { %53 = dma.hbm_to_vmem [thread:$0]  %s1088_s3, 1024, %s48_s28, [#allocation6], %s871_s13, %s871_s13, %s872_s14  }
  0x35   :  { %s817_s20 = scalar_lea.hbm %s1090_s5, 1024 }
  0x36   :  { %p818_p10 = scmp.ne.s32.totalorder %s1090_s5, %s817_s20  ;;  %p821_p11 = scmp.lt.u32.totalorder %s817_s20, %s1090_s5 }
  0x38   :  { %p823_p12 = pnand %p821_p11, %p818_p10 }
  0x3a   :  { %826 = shalt.err (!%p823_p12)
}
  0x3b   :  { %s827_s1 = scalar_lea.vmem %s957_s30, 1024  ;;  %p832_p0 = scmp.lt.s32.totalorder %s957_s30, %s957_s30 }
  0x3c   :  { %p828_p13 = scmp.ne.s32.totalorder %s957_s30, %s827_s1  ;;  %p833_p1 = scmp.lt.s32.totalorder %s827_s1, %s827_s1 }
  0x3e   :  { %p834_p2 = por %p833_p1, %p832_p0 }
  0x40   :  { %p835_p3 = pnand %p834_p2, %p828_p13 }
  0x42   :  { %838 = shalt.err (!%p835_p3)
}
  0x43   :  { %67 = dma.hbm_to_vmem [thread:$0]  %s1090_s5, 1024, %s957_s30, [#allocation9], %s871_s13, %s871_s13, %s872_s14  }
  0x44   :  { %861 = dma.done.wait [#allocation3], 128  }
  0x45   :  { %862 = vsyncadd [#allocation3], 4294967168 }
  0x46   :  { %863 = dma.done.wait [#allocation6], 2048  }
  0x47   :  { %864 = vsyncadd [#allocation6], 4294965248 }
  0x48   :  { %865 = dma.done.wait [#allocation9], 1024  }
  0x49   :  { %866 = vsyncadd [#allocation9], 4294966272  ;;  %v875_v0 = vmov 0.0   ;;  %vm876_vm0 = vmmov 0   ;;  %v726_v1 = vld [vmem:[#allocation5] sm:$0xff]   ;;  %v727_v2 = vld [vmem:[#allocation5 + $0x8] sm:$0xff]  }
  0x4a   :  { %615 = vmatprep.subr.bf16.mxu0 %v875_v0  ;;  %631 = vmatprep.mubr.msk.bf16.mxu0 %vm876_vm0, %v875_v0  ;;  %v728_v3 = vld [vmem:[#allocation5 + $0x10] sm:$0xff]   ;;  %v1002_v4 = vld [vmem:[#allocation7] sm:$0xff]   ;;  %v729_v5 = vld [vmem:[#allocation5 + $0x18] sm:$0xff]   ;;  %s877_s28 = smov [#allocation10]  }
  0x4b   :  { %635 = vmatprep.subr.bf16.mxu1 %v875_v0  ;;  %651 = vmatprep.mubr.msk.bf16.mxu1 %vm876_vm0, %v875_v0  ;;  %v1006_v6 = vld [vmem:[#allocation7 + $0x8] sm:$0xff]   ;;  %v730_v7 = vld [vmem:[#allocation5 + $0x20] sm:$0xff]   ;;  %v1011_v8 = vld [vmem:[#allocation7 + $0x10] sm:$0xff]   ;;  %s528_s29 = sshll.u32 %s877_s28, 4  ;;  %s529_s29 = int_to_ptr.vmem [resolvable:$true] %s528_s29 }
  0x4c   :  { %616 = vmatpush3.bf16.msra.mxu0 %v726_v1  ;;  %636 = vmatpush3.bf16.msra.mxu1 %v1002_v4  ;;  %v731_v9 = vld [vmem:[#allocation5 + $0x28] sm:$0xff]   ;;  %v1014_v10 = vld [vmem:[#allocation7 + $0x18] sm:$0xff]   ;;  %v732_v11 = vld [vmem:[#allocation5 + $0x30] sm:$0xff]   ;;  %s839_s30 = scalar_lea.vmem %s529_s29, 256  ;;  %p844_p5 = scmp.lt.s32.totalorder %s529_s29, %s529_s29 }
  0x4d   :  { %617 = vmatprep.subr.bf16.mxu0 %v875_v0  ;;  %637 = vmatprep.subr.bf16.mxu1 %v875_v0  ;;  %v739_v12 = vld [vmem:[#allocation7 + $0x20] sm:$0xff]   ;;  %v733_v13 = vld [vmem:[#allocation5 + $0x38] sm:$0xff]   ;;  %v740_v14 = vld [vmem:[#allocation7 + $0x28] sm:$0xff]   ;;  %p840_p4 = scmp.ne.s32.totalorder %s529_s29, %s839_s30  ;;  %p845_p6 = scmp.lt.s32.totalorder %s839_s30, %s839_s30 }
  0x4e   :  { %v734_v15 = vld [vmem:[#allocation2] sm:$0xff]   ;;  %v741_v16 = vld [vmem:[#allocation7 + $0x30] sm:$0xff]   ;;  %v743_v38 = vld [vmem:[#allocation8] sm:$0xff]  }
  0x4f   :  { %v742_v17 = vld [vmem:[#allocation7 + $0x38] sm:$0xff]   ;;  %v744_v39 = vld [vmem:[#allocation8 + $0x8] sm:$0xff]   ;;  %v745_v40 = vld [vmem:[#allocation8 + $0x10] sm:$0xff]   ;;  %p846_p7 = por %p845_p6, %p844_p5 }
  0x50   :  { %618 = vmatpush3.bf16.msra.mxu0 %v727_v2  ;;  %638 = vmatpush3.bf16.msra.mxu1 %v1006_v6  ;;  %v542_v18 = vld [vmem:[%s1087_s2] ss:$0 sm:$0xff]  ;;  %v747_v42 = vld [vmem:[#allocation8 + $0x20] sm:$0xff]   ;;  %v748_v43 = vld [vmem:[#allocation8 + $0x28] sm:$0xff]  }
  0x51   :  { %619 = vmatprep.subr.bf16.mxu0 %v875_v0  ;;  %639 = vmatprep.subr.bf16.mxu1 %v875_v0  ;;  %v552_v28 = vld [vmem:[%s1089_s4] ss:$0 sm:$0xff]  ;;  %v749_v53 = vld [vmem:[#allocation8 + $0x30] sm:$0xff]   ;;  %p847_p8 = pnand %p846_p7, %p840_p4 }
  0x52   :  { %v746_v41 = vld [vmem:[#allocation8 + $0x18] sm:$0xff]  }
  0x53   :  { %v750_v54 = vld [vmem:[#allocation8 + $0x38] sm:$0xff]  }
  0x54   :  { %620 = vmatpush3.bf16.msra.mxu0 %v728_v3  ;;  %640 = vmatpush3.bf16.msra.mxu1 %v1011_v8  ;;  %v561_v1 = vld [vmem:[%s1091_s6] ss:$0 sm:$0xff] }
  0x55   :  { %621 = vmatprep.subr.bf16.mxu0 %v875_v0  ;;  %641 = vmatprep.subr.bf16.mxu1 %v875_v0 }
  0x58   :  { %622 = vmatpush3.bf16.msra.mxu0 %v729_v5  ;;  %642 = vmatpush3.bf16.msra.mxu1 %v1014_v10 }
  0x59   :  { %623 = vmatprep.subr.bf16.mxu0 %v875_v0  ;;  %643 = vmatprep.subr.bf16.mxu1 %v875_v0 }
  0x5c   :  { %624 = vmatpush3.bf16.msra.mxu0 %v730_v7  ;;  %644 = vmatpush3.bf16.msra.mxu1 %v739_v12 }
  0x5d   :  { %625 = vmatprep.subr.bf16.mxu0 %v875_v0  ;;  %645 = vmatprep.subr.bf16.mxu1 %v875_v0 }
  0x60   :  { %626 = vmatpush3.bf16.msra.mxu0 %v731_v9  ;;  %646 = vmatpush3.bf16.msra.mxu1 %v740_v14 }
  0x61   :  { %627 = vmatprep.subr.bf16.mxu0 %v875_v0  ;;  %647 = vmatprep.subr.bf16.mxu1 %v875_v0 }
  0x64   :  { %628 = vmatpush3.bf16.msra.mxu0 %v732_v11  ;;  %648 = vmatpush3.bf16.msra.mxu1 %v741_v16 }
  0x65   :  { %629 = vmatprep.subr.bf16.mxu0 %v875_v0  ;;  %649 = vmatprep.subr.bf16.mxu1 %v875_v0 }
  0x68   :  { %630 = vmatpush3.bf16.msra.mxu0 %v733_v13  ;;  %650 = vmatpush3.bf16.msra.mxu1 %v742_v17 }
  0x69   :  { %655 = vmatprep.subr.bf16.mxu0 %v875_v0  ;;  %675 = vmatprep.subr.bf16.mxu1 %v875_v0 }
  0x6b   :  { %632 = vmatmul.mubr.bf16.vlgmr.msra.gmra.mrb[0].mxu0 %v734_v15 }
  0x6c   :  { %656 = vmatpush3.bf16.msra.mxu0 %v1002_v4  ;;  %671 = vmatprep.mubr.msk.bf16.mxu0 %vm876_vm0, %v875_v0 }
  0x6d   :  { %657 = vmatprep.subr.bf16.mxu0 %v875_v0 }
  0x70   :  { %658 = vmatpush3.bf16.msra.mxu0 %v1006_v6 }
  0x71   :  { %659 = vmatprep.subr.bf16.mxu0 %v875_v0 }
  0x74   :  { %660 = vmatpush3.bf16.msra.mxu0 %v1011_v8 }
  0x75   :  { %661 = vmatprep.subr.bf16.mxu0 %v875_v0 }
  0x78   :  { %662 = vmatpush3.bf16.msra.mxu0 %v1014_v10 }
  0x79   :  { %663 = vmatprep.subr.bf16.mxu0 %v875_v0 }
  0x7c   :  { %664 = vmatpush3.bf16.msra.mxu0 %v739_v12 }
  0x7d   :  { %665 = vmatprep.subr.bf16.mxu0 %v875_v0 }
  0x80   :  { %666 = vmatpush3.bf16.msra.mxu0 %v740_v14 }
  0x81   :  { %667 = vmatprep.subr.bf16.mxu0 %v875_v0 }
  0x84   :  { %668 = vmatpush3.bf16.msra.mxu0 %v741_v16 }
  0x85   :  { %669 = vmatprep.subr.bf16.mxu0 %v875_v0 }
  0x88   :  { %670 = vmatpush3.bf16.msra.mxu0 %v742_v17 }
  0x89   :  { %695 = vmatprep.subr.bf16.mxu0 %v875_v0 }
 0x13e   :  { %v198_v19 = vpop.f32.mrb[0].mxu0 }
 0x13f   :  { %v199_v20 = vadd.f32 %v542_v18, %v198_v19  ;;  %v633_v21 = vpop.f32.mrb[1].mxu0 }
 0x140   :  { %v201_v22 = vpop.f32.mrb[2].mxu0 }
 0x141   :  { %v202_v23 = vadd.f32 %v542_v18, %v201_v22  ;;  %v634_v24 = vpop.f32.mrb[3].mxu0  ;;  %v205_v25 = vmax.f32 %v199_v20, 0.0 }
 0x143   :  { %v206_v26 = vmax.f32 %v202_v23, 0.0 }
 0x145   :  { %v207_v27 = vpack.c.bf16 %v206_v26, %v205_v25 }
 0x147   :  { %652 = vmatmul.mubr.bf16.vlgmr.msra.gmra.mrb[0].mxu1 %v207_v27 }
 0x148   :  { %676 = vmatpush3.bf16.msra.mxu1 %v1002_v4  ;;  %691 = vmatprep.mubr.msk.bf16.mxu1 %vm876_vm0, %v875_v0 }
 0x149   :  { %677 = vmatprep.subr.bf16.mxu1 %v875_v0 }
 0x14c   :  { %678 = vmatpush3.bf16.msra.mxu1 %v1006_v6 }
 0x14d   :  { %679 = vmatprep.subr.bf16.mxu1 %v875_v0 }
 0x150   :  { %680 = vmatpush3.bf16.msra.mxu1 %v1011_v8 }
 0x151   :  { %681 = vmatprep.subr.bf16.mxu1 %v875_v0 }
 0x154   :  { %682 = vmatpush3.bf16.msra.mxu1 %v1014_v10 }
 0x155   :  { %683 = vmatprep.subr.bf16.mxu1 %v875_v0 }
 0x158   :  { %684 = vmatpush3.bf16.msra.mxu1 %v739_v12 }
 0x159   :  { %685 = vmatprep.subr.bf16.mxu1 %v875_v0 }
 0x15c   :  { %686 = vmatpush3.bf16.msra.mxu1 %v740_v14 }
 0x15d   :  { %687 = vmatprep.subr.bf16.mxu1 %v875_v0 }
 0x160   :  { %688 = vmatpush3.bf16.msra.mxu1 %v741_v16 }
 0x161   :  { %689 = vmatprep.subr.bf16.mxu1 %v875_v0 }
 0x164   :  { %690 = vmatpush3.bf16.msra.mxu1 %v742_v17 }
 0x21a   :  { %v312_v29 = vpop.f32.mrb[0].mxu1 }
 0x21b   :  { %v313_v30 = vadd.f32 %v552_v28, %v312_v29  ;;  %v653_v31 = vpop.f32.mrb[1].mxu1 }
 0x21c   :  { %v315_v32 = vpop.f32.mrb[2].mxu1 }
 0x21d   :  { %v316_v33 = vadd.f32 %v552_v28, %v315_v32  ;;  %v654_v34 = vpop.f32.mrb[3].mxu1  ;;  %v319_v35 = vmax.f32 %v313_v30, 0.0 }
 0x21f   :  { %v320_v36 = vmax.f32 %v316_v33, 0.0 }
 0x221   :  { %v321_v37 = vpack.c.bf16 %v320_v36, %v319_v35 }
 0x223   :  { %672 = vmatmul.mubr.bf16.vlgmr.msra.gmra.mrb[4].mxu0 %v321_v37 }
 0x224   :  { %711 = vmatprep.mubr.msk.bf16.mxu0 %vm876_vm0, %v875_v0  ;;  %696 = vmatpush3.bf16.msra.mxu0 %v743_v38 }
 0x225   :  { %697 = vmatprep.subr.bf16.mxu0 %v875_v0 }
 0x228   :  { %698 = vmatpush3.bf16.msra.mxu0 %v744_v39 }
 0x229   :  { %699 = vmatprep.subr.bf16.mxu0 %v875_v0 }
 0x22c   :  { %700 = vmatpush3.bf16.msra.mxu0 %v745_v40 }
 0x22d   :  { %701 = vmatprep.subr.bf16.mxu0 %v875_v0 }
 0x230   :  { %702 = vmatpush3.bf16.msra.mxu0 %v746_v41 }
 0x231   :  { %703 = vmatprep.subr.bf16.mxu0 %v875_v0 }
 0x234   :  { %704 = vmatpush3.bf16.msra.mxu0 %v747_v42 }
 0x235   :  { %705 = vmatprep.subr.bf16.mxu0 %v875_v0 }
 0x238   :  { %706 = vmatpush3.bf16.msra.mxu0 %v748_v43 }
 0x239   :  { %707 = vmatprep.subr.bf16.mxu0 %v875_v0 }
 0x23c   :  { %708 = vmatpush3.bf16.msra.mxu0 %v749_v53 }
 0x23d   :  { %709 = vmatprep.subr.bf16.mxu0 %v875_v0 }
 0x240   :  { %710 = vmatpush3.bf16.msra.mxu0 %v750_v54 }
 0x2f6   :  { %v356_v44 = vpop.f32.mrb[4].mxu0 }
 0x2f7   :  { %v357_v45 = vadd.f32 %v552_v28, %v356_v44  ;;  %v673_v46 = vpop.f32.mrb[5].mxu0 }
 0x2f8   :  { %v359_v47 = vpop.f32.mrb[6].mxu0 }
 0x2f9   :  { %v360_v48 = vadd.f32 %v552_v28, %v359_v47  ;;  %v674_v49 = vpop.f32.mrb[7].mxu0  ;;  %v363_v50 = vmax.f32 %v357_v45, 0.0 }
 0x2fb   :  { %v364_v51 = vmax.f32 %v360_v48, 0.0 }
 0x2fd   :  { %v365_v52 = vpack.c.bf16 %v364_v51, %v363_v50 }
 0x2ff   :  { %692 = vmatmul.mubr.bf16.vlgmr.msra.gmra.mrb[4].mxu1 %v365_v52 }
 0x3d2   :  { %v400_v55 = vpop.f32.mrb[4].mxu1 }
 0x3d3   :  { %v401_v56 = vadd.f32 %v552_v28, %v400_v55  ;;  %v693_v57 = vpop.f32.mrb[5].mxu1 }
 0x3d4   :  { %v403_v58 = vpop.f32.mrb[6].mxu1 }
 0x3d5   :  { %v404_v59 = vadd.f32 %v552_v28, %v403_v58  ;;  %v694_v60 = vpop.f32.mrb[7].mxu1  ;;  %v407_v61 = vmax.f32 %v401_v56, 0.0 }
 0x3d7   :  { %v408_v62 = vmax.f32 %v404_v59, 0.0 }
 0x3d9   :  { %v409_v63 = vpack.c.bf16 %v408_v62, %v407_v61 }
 0x3db   :  { %712 = vmatmul.mubr.bf16.vlgmr.msra.gmra.mrb[8].mxu0 %v409_v63 }
 0x4ae   :  { %v514_v2 = vpop.f32.mrb[8].mxu0 }
 0x4af   :  { %v515_v0 = vadd.f32 %v561_v1, %v514_v2  ;;  %v713_v3 = vpop.f32.mrb[9].mxu0 }
 0x4b0   :  { %v517_v4 = vpop.f32.mrb[10].mxu0 }
 0x4b1   :  { %521 = vst [vmem:[#allocation10] sm:$0xff] %v515_v0  ;;  %v518_v5 = vadd.f32 %v561_v1, %v517_v4  ;;  %v714_v6 = vpop.f32.mrb[11].mxu0 }
 0x4b3   :  { %522 = vst [vmem:[#allocation10 + $0x8] sm:$0xff] %v518_v5 }
 0x4b4   :  { %850 = shalt.err (!%p847_p8)
}
 0x4b5   :  { %s851_s9 = scalar_lea.hbm %s1092_s7, 256 }
 0x4b6   :  { %p852_p9 = scmp.ne.s32.totalorder %s1092_s7, %s851_s9  ;;  %p855_p10 = scmp.lt.u32.totalorder %s851_s9, %s1092_s7 }
 0x4b8   :  { %p857_p11 = pnand %p855_p10, %p852_p9 }
 0x4ba   :  { %860 = shalt.err (!%p857_p11)
}
 0x4bb   :  { %s878_s16 = smov 128   ;;  %s879_s0 = smov 8  }
 0x4bc   :  { %534 = dma.vmem_to_hbm [thread:$0]  %s529_s29, 256, %s1092_s7, [#allocation4], %s878_s16, %s878_s16, %s879_s0  }
 0x4bd   :  { %867 = dma.done.wait [#allocation4], 256  }
 0x4be   :  { %868 = vsyncadd [#allocation4], 4294967040 }
 0x4bf   :  { %538 = vsyncpa [#allocation3], 1 }
 0x4c0   :  { %539 = vsyncpa [#allocation6], 1 }
 0x4c1   :  { %540 = vsyncpa [#allocation9], 1 }
 0x4c2   :  { %541 = vsyncpa [#allocation4], 1 }

</bundles_post_ra>
